<compile_context>
chip_gen: v6e
topology: v6e:2x2x1
jax: 0.10.0
libtpu: 0.0.40
codegen_flags: <defaults>
</compile_context>

<pallas_src>
import jax
import jax.numpy as jnp
from jax import lax
from jax.experimental import pallas as pl
from jax.experimental.pallas import tpu as pltpu

# Hyper-parameters from the module __init__
ST = 0.05            # student temperature
TT = 0.05            # teacher temperature
STRATEGY = "mean"    # with one teacher, s_mean(sims) == the single teacher sim
TEACHERS = ["teacher0"]
EPS = 1e-12          # torch.nn.functional.normalize default eps


def distill_loss_kernel(stu1_ref, stu2_ref, tch2_ref, loss_ref):
    # cast is a no-op for f32 inputs; kept so bf16 HBM inputs also work
    s1 = stu1_ref[...].astype(jnp.float32)
    s2 = stu2_ref[...].astype(jnp.float32)
    t2 = tch2_ref[...].astype(jnp.float32)

    inv_b = 1.0 / s1.shape[0]

    # torch.nn.functional.normalize(x, p=2, dim=-1): x / max(||x||, eps)
    #   == x * rsqrt(max(sum(x*x), eps^2))  (rsqrt -> EUP, divide avoided)
    def inv_norm(x):
        return lax.rsqrt(jnp.maximum(jnp.sum(x * x, axis=-1, keepdims=True),
                                     EPS * EPS))

    # fold 1/temperature into the per-row scale of the RHS operands so the
    # (B,B) logit divides disappear entirely.
    s1n = s1 * inv_norm(s1)
    s2s = s2 * (inv_norm(s2) * (1.0 / ST))
    t2s = t2 * (inv_norm(t2) * (1.0 / TT))

    # bf16 operands into the MXU (f32 accumulation): large matmul-throughput
    # win on v6e/v7x, harmless on v5e.
    s1n_b = s1n.astype(jnp.bfloat16)
    s2s_b = s2s.astype(jnp.bfloat16)
    t2s_b = t2s.astype(jnp.bfloat16)

    # dot_general with contracting dims (1,1): lhs @ rhs.T without an explicit
    # transpose op. gather_with_grad is identity for world_size == 1.
    dn = (((1,), (1,)), ((), ()))
    stu_logits = lax.dot_general(s1n_b, s2s_b, dn,
                                 preferred_element_type=jnp.float32)  # stu_sim/st
    tch_logits = lax.dot_general(s1n_b, t2s_b, dn,
                                 preferred_element_type=jnp.float32)  # tch_sim/tt

    # --- teacher distribution: computed once, shared by both KL terms. ---
    # strategy 'mean' over a single teacher -> tch_logits itself.
    tm = jnp.max(tch_logits, axis=-1, keepdims=True)
    tsh = tch_logits - tm
    te = jnp.exp(tsh)
    sum_te = jnp.sum(te, axis=-1, keepdims=True)
    t = te * pl.reciprocal(sum_te, approx=True)   # EUP approx recip (~2^-14 err)
    log_t = tsh - jnp.log(sum_te)                 # exact log-softmax

    # --- student: one (B,B) exp serves both the row-LSE and the column-LSE ---
    rm = jnp.max(stu_logits, axis=-1, keepdims=True)                   # (B,1)
    e = jnp.exp(stu_logits - rm)                                       # (B,B)
    row_lse = rm + jnp.log(jnp.sum(e, axis=-1, keepdims=True))         # (B,1)

    gmax = jnp.max(rm, axis=0, keepdims=True)                          # (1,1)
    w = jnp.exp(rm - gmax)                                             # (B,1)
    col_sum = jnp.sum(e * w, axis=0, keepdims=True)                    # (1,B)
    col_lse = gmax + jnp.log(col_sum)                                  # (1,B)

    # single (B,B) XLU transpose replaces the third BxBxD MXU matmul.
    stu_logits_t = stu_logits.T

    # Fused KL reduction (uses sum_j t[i,j] == 1 per row):
    #   2*ent - cross1 - cross2
    #     = sum(t*(2*log_t - L - L.T)) + sum(row_lse) + sum(col_lse)
    kl = jnp.sum(t * (2.0 * log_t - stu_logits - stu_logits_t))
    kl = kl + jnp.sum(row_lse) + jnp.sum(col_lse)

    # KLDivLoss(reduction='batchmean') twice; world_size == 1 -> no extra scale.
    loss_ref[0, 0] = kl * inv_b
    # TODO(synk): pos_win_count buffer updates only apply to max* strategies
    #             (not 'mean'), so no stateful counter is emitted here.


def _vmem_limit_bytes(needed):
    # generation-aware cap: use physical VMEM (128 MiB v5e/v6e, 64 MiB v7x)
    # with ~12% headroom instead of a hard-coded 48 MiB.
    cap = 128 << 20
    try:
        info = pltpu.get_tpu_info()
        cap = int(getattr(info, "vmem_capacity_bytes", cap) or cap)
    except Exception:
        pass
    return int(min(int(cap * 0.875), max(int(needed), 4 << 20)))


def multi_teacher_distill_loss(stu1, stu2, tch1, tch2):
    # tch1 is normalized in the torch forward but never used for the loss.
    del tch1
    B, D = stu1.shape
    in_bytes = stu1.dtype.itemsize

    # grid-less all-in-VMEM design: size the scoped VMEM limit from a live
    # intermediate estimate (f32 + bf16 operand copies + ~12 (B,B) f32 temps).
    needed = 30 * B * D + 48 * B * B + (2 << 20)

    cost = pl.CostEstimate(
        flops=4 * B * B * D,                 # two BxBxD matmuls
        transcendentals=2 * B * B + 8 * B,   # teacher + student exps, logs, rsqrt
        bytes_accessed=3 * B * D * in_bytes + 4,
    )

    out = pl.pallas_call(
        distill_loss_kernel,
        out_shape=jax.ShapeDtypeStruct((1, 1), jnp.float32),
        in_specs=[
            pl.BlockSpec(memory_space=pltpu.MemorySpace.VMEM),
            pl.BlockSpec(memory_space=pltpu.MemorySpace.VMEM),
            pl.BlockSpec(memory_space=pltpu.MemorySpace.VMEM),
        ],
        out_specs=pl.BlockSpec(memory_space=pltpu.MemorySpace.SMEM),
        compiler_params=pltpu.CompilerParams(
            vmem_limit_bytes=_vmem_limit_bytes(needed)),
        cost_estimate=cost,
    )(stu1, stu2, tch2)
    return out[0, 0]


def _reference_loss(stu1, stu2, tch2):
    # faithful mirror of the torch math (naive f32 formulation) for validation
    def l2n(x):
        nrm = jnp.sqrt(jnp.sum(x * x, axis=-1, keepdims=True))
        return x / jnp.maximum(nrm, EPS)

    def kl_batchmean(stu_sim, tch_sim):
        tl = tch_sim / TT
        tl = tl - jnp.max(tl, axis=-1, keepdims=True)
        te = jnp.exp(tl)
        t = te / jnp.sum(te, axis=-1, keepdims=True)
        log_t = tl - jnp.log(jnp.sum(te, axis=-1, keepdims=True))
        sl = stu_sim / ST
        sl = sl - jnp.max(sl, axis=-1, keepdims=True)
        log_s = sl - jnp.log(jnp.sum(jnp.exp(sl), axis=-1, keepdims=True))
        return jnp.sum(t * (log_t - log_s)) / stu_sim.shape[0]

    s1 = l2n(stu1.astype(jnp.float32))
    s2 = l2n(stu2.astype(jnp.float32))
    t2 = l2n(tch2.astype(jnp.float32))
    stu_sim = s1 @ s2.T
    tch_sim = s1 @ t2.T
    return kl_batchmean(stu_sim, tch_sim) + kl_batchmean(stu_sim.T, tch_sim)


if __name__ == "__main__":
    B, D = 8, 32
    key = jax.random.PRNGKey(0)
    k1, k2, k3, k4 = jax.random.split(key, 4)
    stu1 = jax.random.normal(k1, (B, D), dtype=jnp.float32)
    stu2 = jax.random.normal(k2, (B, D), dtype=jnp.float32)
    tch1 = jax.random.normal(k3, (B, D), dtype=jnp.float32)  # single teacher, view 1
    tch2 = jax.random.normal(k4, (B, D), dtype=jnp.float32)  # single teacher, view 2

    loss = multi_teacher_distill_loss(stu1, stu2, tch1, tch2)
    jax.block_until_ready(loss)

    ref = _reference_loss(stu1, stu2, tch2)
    # bf16 MXU operands (f32 accumulate) -> ~1e-2 relative vs. the f32 reference.
    assert jnp.allclose(loss, ref, rtol=5e-2, atol=1e-1), (loss, ref)

    print("KERNEL_OK")
</pallas_src>

<mosaic_0001>
module attributes {stable_mosaic.version = 11 : i64} {
  func.func @distill_loss_kernel(%arg0: memref<8x32xf32, #tpu.memory_space<vmem>>, %arg1: memref<8x32xf32, #tpu.memory_space<vmem>>, %arg2: memref<8x32xf32, #tpu.memory_space<vmem>>, %arg3: memref<1x1xf32, #tpu.memory_space<smem>>) attributes {dimension_semantics = [], scalar_prefetch = 0 : i64, scratch_operands = 0 : i64, tpu.core_type = #tpu.core_type<tc>} {
    %c0 = arith.constant 0 : index
    %c0_0 = arith.constant 0 : index
    %0 = vector.load %arg0[%c0, %c0_0] : memref<8x32xf32, #tpu.memory_space<vmem>>, vector<8x32xf32>
    %c0_1 = arith.constant 0 : index
    %c0_2 = arith.constant 0 : index
    %1 = vector.load %arg1[%c0_1, %c0_2] : memref<8x32xf32, #tpu.memory_space<vmem>>, vector<8x32xf32>
    %c0_3 = arith.constant 0 : index
    %c0_4 = arith.constant 0 : index
    %2 = vector.load %arg2[%c0_3, %c0_4] : memref<8x32xf32, #tpu.memory_space<vmem>>, vector<8x32xf32>
    %3 = arith.mulf %0, %0 : vector<8x32xf32>
    %cst = arith.constant dense<0.000000e+00> : vector<8xf32>
    %4 = vector.multi_reduction <add>, %3, %cst [1] : vector<8x32xf32> to vector<8xf32>
    %5 = vector.shape_cast %4 : vector<8xf32> to vector<8x1xf32>
    %cst_5 = arith.constant 1.000000e-24 : f32
    %6 = vector.broadcast %cst_5 : f32 to vector<8x1xf32>
    %7 = arith.maximumf %5, %6 : vector<8x1xf32>
    %8 = math.rsqrt %7 : vector<8x1xf32>
    %9 = vector.broadcast %8 : vector<8x1xf32> to vector<8x32xf32>
    %10 = arith.mulf %0, %9 : vector<8x32xf32>
    %11 = arith.mulf %1, %1 : vector<8x32xf32>
    %cst_6 = arith.constant dense<0.000000e+00> : vector<8xf32>
    %12 = vector.multi_reduction <add>, %11, %cst_6 [1] : vector<8x32xf32> to vector<8xf32>
    %13 = vector.shape_cast %12 : vector<8xf32> to vector<8x1xf32>
    %cst_7 = arith.constant 1.000000e-24 : f32
    %14 = vector.broadcast %cst_7 : f32 to vector<8x1xf32>
    %15 = arith.maximumf %13, %14 : vector<8x1xf32>
    %16 = math.rsqrt %15 : vector<8x1xf32>
    %cst_8 = arith.constant 2.000000e+01 : f32
    %17 = vector.broadcast %cst_8 : f32 to vector<8x1xf32>
    %18 = arith.mulf %16, %17 : vector<8x1xf32>
    %19 = vector.broadcast %18 : vector<8x1xf32> to vector<8x32xf32>
    %20 = arith.mulf %1, %19 : vector<8x32xf32>
    %21 = arith.mulf %2, %2 : vector<8x32xf32>
    %cst_9 = arith.constant dense<0.000000e+00> : vector<8xf32>
    %22 = vector.multi_reduction <add>, %21, %cst_9 [1] : vector<8x32xf32> to vector<8xf32>
    %23 = vector.shape_cast %22 : vector<8xf32> to vector<8x1xf32>
    %cst_10 = arith.constant 1.000000e-24 : f32
    %24 = vector.broadcast %cst_10 : f32 to vector<8x1xf32>
    %25 = arith.maximumf %23, %24 : vector<8x1xf32>
    %26 = math.rsqrt %25 : vector<8x1xf32>
    %cst_11 = arith.constant 2.000000e+01 : f32
    %27 = vector.broadcast %cst_11 : f32 to vector<8x1xf32>
    %28 = arith.mulf %26, %27 : vector<8x1xf32>
    %29 = vector.broadcast %28 : vector<8x1xf32> to vector<8x32xf32>
    %30 = arith.mulf %2, %29 : vector<8x32xf32>
    %31 = arith.truncf %10 : vector<8x32xf32> to vector<8x32xbf16>
    %32 = arith.truncf %20 : vector<8x32xf32> to vector<8x32xbf16>
    %33 = arith.truncf %30 : vector<8x32xf32> to vector<8x32xbf16>
    %cst_12 = arith.constant dense<0.000000e+00> : vector<8x8xf32>
    %34 = tpu.matmul %31, %32, %cst_12 {dimension_numbers = #tpu.dot_dimension_numbers<[1], [1], [0], [0], [0, 0, 1, 0], [], []>} : vector<8x32xbf16>, vector<8x32xbf16>, vector<8x8xf32> -> vector<8x8xf32>
    %cst_13 = arith.constant dense<0.000000e+00> : vector<8x8xf32>
    %35 = tpu.matmul %31, %33, %cst_13 {dimension_numbers = #tpu.dot_dimension_numbers<[1], [1], [0], [0], [0, 0, 1, 0], [], []>} : vector<8x32xbf16>, vector<8x32xbf16>, vector<8x8xf32> -> vector<8x8xf32>
    %cst_14 = arith.constant dense<0xFF800000> : vector<8xf32>
    %36 = vector.multi_reduction <maximumf>, %35, %cst_14 [1] : vector<8x8xf32> to vector<8xf32>
    %37 = vector.shape_cast %36 : vector<8xf32> to vector<8x1xf32>
    %38 = vector.broadcast %37 : vector<8x1xf32> to vector<8x8xf32>
    %39 = arith.subf %35, %38 : vector<8x8xf32>
    %40 = math.exp %39 : vector<8x8xf32>
    %cst_15 = arith.constant dense<0.000000e+00> : vector<8xf32>
    %41 = vector.multi_reduction <add>, %40, %cst_15 [1] : vector<8x8xf32> to vector<8xf32>
    %42 = vector.shape_cast %41 : vector<8xf32> to vector<8x1xf32>
    %43 = tpu.reciprocal %42 {approx = true} : vector<8x1xf32> -> vector<8x1xf32>
    %44 = vector.broadcast %43 : vector<8x1xf32> to vector<8x8xf32>
    %45 = arith.mulf %40, %44 : vector<8x8xf32>
    %46 = math.log %42 : vector<8x1xf32>
    %47 = vector.broadcast %46 : vector<8x1xf32> to vector<8x8xf32>
    %48 = arith.subf %39, %47 : vector<8x8xf32>
    %cst_16 = arith.constant dense<0xFF800000> : vector<8xf32>
    %49 = vector.multi_reduction <maximumf>, %34, %cst_16 [1] : vector<8x8xf32> to vector<8xf32>
    %50 = vector.shape_cast %49 : vector<8xf32> to vector<8x1xf32>
    %51 = vector.broadcast %50 : vector<8x1xf32> to vector<8x8xf32>
    %52 = arith.subf %34, %51 : vector<8x8xf32>
    %53 = math.exp %52 : vector<8x8xf32>
    %cst_17 = arith.constant dense<0.000000e+00> : vector<8xf32>
    %54 = vector.multi_reduction <add>, %53, %cst_17 [1] : vector<8x8xf32> to vector<8xf32>
    %55 = vector.shape_cast %54 : vector<8xf32> to vector<8x1xf32>
    %56 = math.log %55 : vector<8x1xf32>
    %57 = arith.addf %50, %56 : vector<8x1xf32>
    %cst_18 = arith.constant dense<0xFF800000> : vector<1xf32>
    %58 = vector.multi_reduction <maximumf>, %50, %cst_18 [0] : vector<8x1xf32> to vector<1xf32>
    %59 = vector.shape_cast %58 : vector<1xf32> to vector<1x1xf32>
    %60 = vector.broadcast %59 : vector<1x1xf32> to vector<8x1xf32>
    %61 = arith.subf %50, %60 : vector<8x1xf32>
    %62 = math.exp %61 : vector<8x1xf32>
    %63 = vector.broadcast %62 : vector<8x1xf32> to vector<8x8xf32>
    %64 = arith.mulf %53, %63 : vector<8x8xf32>
    %cst_19 = arith.constant dense<0.000000e+00> : vector<8xf32>
    %65 = vector.multi_reduction <add>, %64, %cst_19 [0] : vector<8x8xf32> to vector<8xf32>
    %66 = vector.shape_cast %65 : vector<8xf32> to vector<1x8xf32>
    %67 = math.log %66 : vector<1x8xf32>
    %68 = vector.broadcast %59 : vector<1x1xf32> to vector<1x8xf32>
    %69 = arith.addf %68, %67 : vector<1x8xf32>
    %70 = tpu.transpose %34, [1, 0] : vector<8x8xf32> -> vector<8x8xf32>
    %cst_20 = arith.constant 2.000000e+00 : f32
    %71 = vector.broadcast %cst_20 : f32 to vector<8x8xf32>
    %72 = arith.mulf %71, %48 : vector<8x8xf32>
    %73 = arith.subf %72, %34 : vector<8x8xf32>
    %74 = arith.subf %73, %70 : vector<8x8xf32>
    %75 = arith.mulf %45, %74 : vector<8x8xf32>
    %76 = vector.shape_cast %75 : vector<8x8xf32> to vector<1x8x8xf32>
    %cst_21 = arith.constant dense<0.000000e+00> : vector<1xf32>
    %77 = vector.multi_reduction <add>, %76, %cst_21 [1, 2] : vector<1x8x8xf32> to vector<1xf32>
    %78 = vector.shape_cast %77 : vector<1xf32> to vector<1x1x1xf32>
    %79 = vector.extract %78[0, 0, 0] : f32 from vector<1x1x1xf32>
    %80 = vector.shape_cast %57 : vector<8x1xf32> to vector<1x8x1xf32>
    %cst_22 = arith.constant dense<0.000000e+00> : vector<1xf32>
    %81 = vector.multi_reduction <add>, %80, %cst_22 [1, 2] : vector<1x8x1xf32> to vector<1xf32>
    %82 = vector.shape_cast %81 : vector<1xf32> to vector<1x1x1xf32>
    %83 = vector.extract %82[0, 0, 0] : f32 from vector<1x1x1xf32>
    %84 = arith.addf %79, %83 : f32
    %85 = vector.shape_cast %69 : vector<1x8xf32> to vector<1x1x8xf32>
    %cst_23 = arith.constant dense<0.000000e+00> : vector<1xf32>
    %86 = vector.multi_reduction <add>, %85, %cst_23 [1, 2] : vector<1x1x8xf32> to vector<1xf32>
    %87 = vector.shape_cast %86 : vector<1xf32> to vector<1x1x1xf32>
    %88 = vector.extract %87[0, 0, 0] : f32 from vector<1x1x1xf32>
    %89 = arith.addf %84, %88 : f32
    %cst_24 = arith.constant 1.250000e-01 : f32
    %90 = arith.mulf %89, %cst_24 : f32
    %c0_25 = arith.constant 0 : index
    %c0_26 = arith.constant 0 : index
    %91 = memref.load %arg3[%c0_25, %c0_26] : memref<1x1xf32, #tpu.memory_space<smem>>
    memref.store %90, %arg3[%c0_25, %c0_26] : memref<1x1xf32, #tpu.memory_space<smem>>
    return
  }
}

</mosaic_0001>

<bundles_post_ra>
// kernel: tpu_custom_call.1
= control target key start
LH: loop header
LB: loop body
LE: loop exit
PB: predicated region body
PF: predicated region fallthrough
CT: control target
= control target key end

     0   :  { %8 = vsyncpa [#allocation3], 0  ;;  %s480_s0 = inlined_call_operand.hbm [shape: f32[8,32], index: 0, kind: input, shape index: {}]   ;;  %s481_s1 = inlined_call_operand.hbm [shape: f32[8,32], index: 1, kind: input, shape index: {}]   ;;  %s482_s2 = inlined_call_operand.hbm [shape: f32[8,32], index: 2, kind: input, shape index: {}]   ;;  %s483_s3 = inlined_call_operand.hbm [shape: f32[1,1], index: 3, kind: output, shape index: {}]  }
   0x1   :  { %9 = vsyncpa [#allocation6], 0 }
   0x2   :  { %10 = vsyncpa [#allocation4], 0  ;;  %s429_s12 = smov [#allocation5]   ;;  %s430_s14 = smov [#allocation2]  }
   0x3   :  { %s27_s13 = sshll.u32 %s429_s12, 4  ;;  %s17_s15 = sshll.u32 %s430_s14, 4  ;;  %s28_s13 = int_to_ptr.vmem [resolvable:$true] %s27_s13  ;;  %s18_s15 = int_to_ptr.vmem [resolvable:$true] %s17_s15 }
   0x4   :  { %s363_s16 = scalar_lea.vmem %s28_s13, 128  ;;  %p368_p1 = scmp.lt.s32.totalorder %s28_s13, %s28_s13 }
   0x5   :  { %p364_p0 = scmp.ne.s32.totalorder %s28_s13, %s363_s16  ;;  %p369_p2 = scmp.lt.s32.totalorder %s363_s16, %s363_s16 }
   0x7   :  { %p370_p3 = por %p369_p2, %p368_p1 }
   0x9   :  { %p371_p4 = pnand %p370_p3, %p364_p0 }
   0xb   :  { %374 = shalt.err (!%p371_p4)
}
   0xc   :  { %30 = dma.hbm_to_vmem [thread:$0]  %s481_s1, 128, %s28_s13, [#allocation6]  }
   0xd   :  { %s383_s19 = scalar_lea.vmem %s18_s15, 128  ;;  %p388_p6 = scmp.lt.s32.totalorder %s18_s15, %s18_s15 }
   0xe   :  { %p384_p5 = scmp.ne.s32.totalorder %s18_s15, %s383_s19  ;;  %p389_p7 = scmp.lt.s32.totalorder %s383_s19, %s383_s19 }
  0x10   :  { %p390_p8 = por %p389_p7, %p388_p6 }
  0x12   :  { %p391_p9 = pnand %p390_p8, %p384_p5 }
  0x14   :  { %394 = shalt.err (!%p391_p9)
}
  0x15   :  { %20 = dma.hbm_to_vmem [thread:$0]  %s480_s0, 128, %s18_s15, [#allocation3]  }
  0x16   :  { %s431_s22 = smov [#allocation7]  }
  0x17   :  { %s37_s23 = sshll.u32 %s431_s22, 4  ;;  %s38_s23 = int_to_ptr.vmem [resolvable:$true] %s37_s23 }
  0x18   :  { %s403_s24 = scalar_lea.vmem %s38_s23, 128  ;;  %p408_p11 = scmp.lt.s32.totalorder %s38_s23, %s38_s23 }
  0x19   :  { %p404_p10 = scmp.ne.s32.totalorder %s38_s23, %s403_s24  ;;  %p409_p12 = scmp.lt.s32.totalorder %s403_s24, %s403_s24 }
  0x1b   :  { %p410_p13 = por %p409_p12, %p408_p11 }
  0x1d   :  { %p411_p0 = pnand %p410_p13, %p404_p10 }
  0x1f   :  { %414 = shalt.err (!%p411_p0)
}
  0x20   :  { %40 = dma.hbm_to_vmem [thread:$0]  %s482_s2, 128, %s38_s23, [#allocation6]  }
  0x21   :  { %423 = dma.done.wait [#allocation3], 128  }
  0x22   :  { %424 = vsyncadd [#allocation3], 4294967168 }
  0x23   :  { %425 = dma.done.wait [#allocation6], 256  }
  0x24   :  { %426 = vsyncadd [#allocation6], 4294967040  ;;  %v53_v0 = vld [vmem:[#allocation7] sm:$0xff]  ;;  %vm55_vm0 = vcmask 261120   ;;  %v52_v1 = vld [vmem:[#allocation5] sm:$0xff]  ;;  %v432_v9 = vmov 0.0  }
  0x25   :  { %v51_v2 = vld [vmem:[#allocation2] sm:$0xff]  ;;  %v70_v3 = vmul.f32 %v53_v0, %v53_v0  ;;  %v62_v4 = vmul.f32 %v52_v1, %v52_v1  ;;  %317 = vmatprep.subr.bf16.mxu1 %v432_v9  ;;  %311 = vmatprep.subr.bf16.mxu0 %v432_v9  ;;  %vm433_vm1 = vmmov 0   ;;  %vm170_vm2 = vcmask 64512   ;;  %s434_s30 = smov [#allocation8]  }
  0x26   :  { %v54_v5 = vmul.f32 %v51_v2, %v51_v2  ;;  %319 = vmatprep.mubr.msk.bf16.mxu1 %vm433_vm1, %v432_v9  ;;  %313 = vmatprep.mubr.msk.bf16.mxu0 %vm433_vm1, %v432_v9  ;;  %vm263_vm3 = vcmask 7168   ;;  %vm275_vm4 = vcmask 57344  }
  0x27   :  { %v71_v6 = vsel %vm55_vm0, %v70_v3, 0.0  ;;  %v63_v8 = vsel %vm55_vm0, %v62_v4, 0.0 }
  0x28   :  { %v56_v7 = vsel %vm55_vm0, %v54_v5, 0.0  ;;  %72 = vadd.xlane.f32.xlu0 %v71_v6 }
  0x29   :  { %57 = vadd.xlane.f32.xlu1 %v56_v7 }
  0x2c   :  { %64 = vadd.xlane.f32.xlu0 %v63_v8 }
  0xb1   :  { %v73_v10 = vpop.xlane.xlu0 %72 }
  0xb2   :  { %v58_v11 = vpop.xlane.xlu1 %57  ;;  %v74_v12 = vmax.f32 %v73_v10, 1e-24 }
  0xb3   :  { %v59_v13 = vmax.f32 %v58_v11, 1e-24 }
  0xb4   :  { %335 = vrsqrt.f32 %v74_v12 }
  0xb5   :  { %v65_v14 = vpop.xlane.xlu0 %64  ;;  %337 = vrsqrt.f32 %v59_v13 }
  0xb6   :  { %v66_v15 = vmax.f32 %v65_v14, 1e-24 }
  0xb8   :  { %339 = vrsqrt.f32 %v66_v15 }
  0xc1   :  { %v336_v16 = vpop.eup %335 }
  0xc2   :  { %v76_v17 = vmul.f32 20.0, %v336_v16  ;;  %v338_v18 = vpop.eup %337 }
  0xc3   :  { %v61_v25 = vmul.f32 %v338_v18, %v51_v2 }
  0xc4   :  { %v77_v19 = vmul.f32 %v76_v17, %v53_v0 }
  0xc5   :  { %v340_v20 = vpop.eup %339  ;;  %v78_v28 = vpack.c.bf16 %v61_v25, %v61_v25 }
  0xc6   :  { %v68_v21 = vmul.f32 20.0, %v340_v20  ;;  %v80_v22 = vpack.c.bf16 %v77_v19, %v77_v19 }
  0xc8   :  { %v128_v23 = vsel %vm55_vm0, %v80_v22, 0  ;;  %v69_v24 = vmul.f32 %v68_v21, %v52_v1 }
  0xc9   :  { %318 = vmatpush3.bf16.xpose.msra.mxu1 %v128_v23 }
  0xca   :  { %v79_v26 = vpack.c.bf16 %v69_v24, %v69_v24 }
  0xcc   :  { %v85_v27 = vsel %vm55_vm0, %v79_v26, 0 }
  0xcd   :  { %312 = vmatpush3.bf16.xpose.msra.mxu0 %v85_v27 }
  0xd0   :  { %320 = vmatmul.mubr.msk.bf16.vlgmr.msra.gmra.mxu1 %vm55_vm0, %v78_v28 }
  0xd4   :  { %314 = vmatmul.mubr.msk.bf16.vlgmr.msra.gmra.mxu0 %vm55_vm0, %v78_v28 }
 0x190   :  { %v164_v29 = vpop.f32.mrf.mxu1 }
 0x191   :  { %v171_v30 = vsel %vm170_vm2, %v164_v29, -inf }
 0x192   :  { %172 = vmax.xlane.f32.xlu1 %v171_v30  ;;  %v321_v31 = vpop.f32.mrf.mxu1 }
 0x194   :  { %v121_v32 = vpop.f32.mrf.mxu0  ;;  %v167_v33 = vpop.f32.mrf.mxu1 }
 0x195   :  { %v185_v34 = vsel %vm170_vm2, %v121_v32, -inf }
 0x196   :  { %v322_v35 = vpop.f32.mrf.mxu1  ;;  %186 = vmax.xlane.f32.xlu0 %v185_v34  ;;  %v315_v36 = vpop.f32.mrf.mxu0 }
 0x198   :  { %v124_v37 = vpop.f32.mrf.mxu0 }
 0x19a   :  { %v316_v38 = vpop.f32.mrf.mxu0 }
 0x21b   :  { %v173_v39 = vpop.xlane.xlu1 %172 }
 0x21c   :  { %v174_v40 = vsub.f32 %v164_v29, %v173_v39 }
 0x21e   :  { %v175_v41 = vmul.f32 1.442695, %v174_v40 }
 0x21f   :  { %v187_v42 = vpop.xlane.xlu0 %186 }
 0x220   :  { %341 = vpow2.f32 %v175_v41  ;;  %v188_v43 = vsub.f32 %v121_v32, %v187_v42  ;;  %v197_v49 = vrot.slane %v187_v42, 4 }
 0x222   :  { %v189_v44 = vmul.f32 1.442695, %v188_v43  ;;  %v198_v50 = vmax.f32 %v187_v42, %v197_v49 }
 0x224   :  { %343 = vpow2.f32 %v189_v44  ;;  %v199_v51 = vrot.slane %v198_v50, 2 }
 0x226   :  { %v200_v52 = vmax.f32 %v198_v50, %v199_v51 }
 0x228   :  { %v201_v53 = vrot.slane %v200_v52, 1 }
 0x22a   :  { %v202_v54 = vmax.f32 %v200_v52, %v201_v53 }
 0x22c   :  { %v203_v55 = vsub.f32 %v187_v42, %v202_v54 }
 0x22d   :  { %v342_v45 = vpop.eup %341 }
 0x22e   :  { %v177_v46 = vsel %vm170_vm2, %v342_v45, 0.0  ;;  %v204_v56 = vmul.f32 1.442695, %v203_v55 }
 0x22f   :  { %178 = vadd.xlane.f32.xlu1 %v177_v46 }
 0x230   :  { %345 = vpow2.f32 %v204_v56 }
 0x231   :  { %v344_v47 = vpop.eup %343 }
 0x232   :  { %v191_v48 = vsel %vm170_vm2, %v344_v47, 0.0 }
 0x233   :  { %192 = vadd.xlane.f32.xlu0 %v191_v48 }
 0x23d   :  { %v346_v57 = vpop.eup %345 }
 0x23e   :  { %v206_v58 = vmul.f32 %v346_v57, %v344_v47 }
 0x240   :  { %v207_v59 = vsel %vm170_vm2, %v206_v58, 0.0 }
 0x241   :  { %v208_v60 = vrot.slane %v207_v59, 4 }
 0x243   :  { %v209_v61 = vadd.f32 %v208_v60, %v207_v59 }
 0x245   :  { %v210_v0 = vrot.slane %v209_v61, 2 }
 0x247   :  { %v211_v1 = vadd.f32 %v210_v0, %v209_v61 }
 0x249   :  { %v212_v2 = vrot.slane %v211_v1, 1 }
 0x24b   :  { %v213_v4 = vadd.f32 %v212_v2, %v211_v1 }
 0x262   :  { %217 = vxpose.xlu1.b32.start.end [1/1] (short) (narrow) %v121_v32, 8 }
 0x2b8   :  { %v179_v63 = vpop.xlane.xlu1 %178 }
 0x2bc   :  { %v193_v62 = vpop.xlane.xlu0 %192 }
 0x2bd   :  { %347 = vlog2.f32 %v193_v62 }
 0x2be   :  { %349 = vlog2.f32 %v179_v63 }
 0x2bf   :  { %351 = vlog2.f32 %v213_v4 }
 0x2c0   :  { %353 = vrcp.f32 %v179_v63 }
 0x2ca   :  { %v348_v3 = vpop.eup %347 }
 0x2cb   :  { %v195_v5 = vmul.f32 0.6931472, %v348_v3  ;;  %v350_v7 = vpop.eup %349 }
 0x2cc   :  { %v183_v9 = vmul.f32 0.6931472, %v350_v7  ;;  %v352_v12 = vpop.eup %351 }
 0x2cd   :  { %v196_v6 = vadd.f32 %v195_v5, %v187_v42  ;;  %v354_v13 = vpop.eup %353  ;;  %v215_v18 = vmul.f32 0.6931472, %v352_v12 }
 0x2ce   :  { %v184_v10 = vsub.f32 %v174_v40, %v183_v9  ;;  %v181_v17 = vmul.f32 %v354_v13, %v342_v45 }
 0x2cf   :  { %v264_v8 = vsel %vm263_vm3, %v196_v6, 0.0  ;;  %v216_v21 = vadd.f32 %v215_v18, %v202_v54 }
 0x2d0   :  { %265 = vadd.xlane.f32.xlu0 %v264_v8  ;;  %v249_v11 = vmul.f32 2.0, %v184_v10 }
 0x2d1   :  { %v276_v22 = vsel %vm275_vm4, %v216_v21, 0.0 }
 0x2d2   :  { %v250_v14 = vsub.f32 %v249_v11, %v121_v32 }
 0x2de   :  { %v233_v15 = vpop.trf.xlu1 }
 0x2df   :  { %v251_v16 = vsub.f32 %v250_v14, %v233_v15 }
 0x2e1   :  { %v252_v19 = vmul.f32 %v251_v16, %v181_v17 }
 0x2e3   :  { %v253_v20 = vsel %vm170_vm2, %v252_v19, 0.0 }
 0x2e4   :  { %254 = vadd.xlane.f32.xlu0 %v253_v20 }
 0x2e8   :  { %277 = vadd.xlane.f32.xlu0 %v276_v22 }
 0x359   :  { %v266_v23 = vpop.xlane.xlu0 %265 }
 0x35a   :  { %v267_v24 = vrot.slane %v266_v23, 4 }
 0x35c   :  { %v268_v25 = vadd.f32 %v267_v24, %v266_v23 }
 0x35e   :  { %v269_v26 = vrot.slane %v268_v25, 2 }
 0x360   :  { %v270_v31 = vadd.f32 %v269_v26, %v268_v25 }
 0x362   :  { %v271_v36 = vrot.slane %v270_v31, 1 }
 0x364   :  { %v272_v41 = vadd.f32 %v271_v36, %v270_v31 }
 0x36d   :  { %v255_v27 = vpop.xlane.xlu0 %254 }
 0x36e   :  { %v256_v28 = vrot.slane %v255_v27, 4 }
 0x370   :  { %v257_v29 = vadd.f32 %v256_v28, %v255_v27 }
 0x371   :  { %v278_v30 = vpop.xlane.xlu0 %277 }
 0x372   :  { %v258_v32 = vrot.slane %v257_v29, 2  ;;  %v279_v33 = vrot.slane %v278_v30, 4 }
 0x374   :  { %v280_v34 = vadd.f32 %v279_v33, %v278_v30  ;;  %v259_v35 = vadd.f32 %v258_v32, %v257_v29 }
 0x376   :  { %v281_v37 = vrot.slane %v280_v34, 2  ;;  %v260_v38 = vrot.slane %v259_v35, 1 }
 0x378   :  { %v282_v39 = vadd.f32 %v281_v37, %v280_v34  ;;  %v261_v40 = vadd.f32 %v260_v38, %v259_v35 }
 0x37a   :  { %323 = vpush %v261_v40  ;;  %v283_v42 = vrot.slane %v282_v39, 1 }
 0x37b   :  { %325 = vpush %v272_v41 }
 0x37c   :  { %v284_v43 = vadd.f32 %v283_v42, %v282_v39 }
 0x37e   :  { %327 = vpush %v284_v43 }
 0x3ab   :  { %s324_s0 = spop %323 }
 0x3ac   :  { %s326_s2 = spop %325 }
 0x3ad   :  { %s274_s26 = sadd.f32 %s326_s2, %s324_s0 }
 0x3af   :  { %s328_s27 = spop %327 }
 0x3b0   :  { %s286_s28 = sadd.f32 %s328_s27, %s274_s26 }
 0x3b2   :  { %s287_s29 = smul.f32 0.125, %s286_s28 }
 0x3b4   :  { %289 = sst [smem:[#allocation8]] %s287_s29 }
 0x3b5   :  { %297 = dma.smem_to_hbm %s434_s30, 16, %s483_s3, [#allocation4]  }
 0x3b6   :  { %427 = dma.done.wait [#allocation4], 16  }
 0x3b7   :  { %428 = vsyncadd [#allocation4], 4294967280 }
 0x3b8   :  { %301 = sfence }
 0x3b9   :  { %302 = vsyncpa [#allocation3], 1 }
 0x3ba   :  { %303 = vsyncpa [#allocation6], 1 }
 0x3bb   :  { %304 = vsyncpa [#allocation4], 1 }

</bundles_post_ra>
